<compile_context>
chip_gen: v5e
topology: v5e:2x2
jax: 0.10.0
libtpu: 0.0.40
codegen_flags: <defaults>
</compile_context>

<pallas_src>
import functools

import jax
import jax.numpy as jnp
import numpy as np
from jax import lax
from jax.experimental import pallas as pl
from jax.experimental.pallas import tpu as pltpu

LEAKY_RATE = 0.1
_MIB = 1024 * 1024


def _vmem_capacity_bytes():
    """Physical VMEM of the local chip (robust fallbacks)."""
    try:
        return int(pltpu.get_tpu_info().vmem_capacity_bytes)
    except Exception:
        pass
    try:
        kind = jax.devices()[0].device_kind.lower()
    except Exception:
        kind = ""
    if any(t in kind for t in ("v4", "v5", "v6")):
        return 128 * _MIB          # v4/v5e/v5p/v6e: 128 MiB per TensorCore
    return 64 * _MIB               # conservative default (v7x: 64 MiB per TC)


def _pick_tile_n1(n1, n2, c_in, d_out, gather_bytes, vmem_cap):
    """Largest N1 tile whose hot-loop live set fits this chip's VMEM."""
    # Batch-constant residents (double-buffered by the pipeline) + weights.
    fixed = 2 * (n2 * d_out * gather_bytes      # g2
                 + 3 * n2 * 4                   # xyz2 (NCW)
                 + n2 * 4)                      # |x2|^2
    fixed += 4 * (c_in + 3 + 1) * d_out * 4 + 2 * _MIB
    budget = int(vmem_cap * 0.75) - fixed
    # Per N1 row: ~4 f32 [1,N2] rows (packed dists, col iota, select temps)
    # plus double-buffered xyz1/feat1 rows and the output rows.
    per_row = 4 * 4 * n2 + 4 * (2 * c_in + 2 * 3 + 2 * d_out)
    cap = budget // max(per_row, 1)
    max_tile = 2048 if vmem_cap >= 96 * _MIB else 1024
    cap = max(128, min(cap, max_tile))
    if n1 <= cap:
        return n1                               # single tile covers all of N1
    return max(128, (cap // 128) * 128)


# ----------------------------------------------------------------------------
# Pallas kernel: one `cross` op, grid = (batch, N1 tiles).
# ----------------------------------------------------------------------------
def _cross_kernel(x1_ref, x2t_ref, f1_ref, g2_ref, sq2_ref,
                  w1_ref, wpos_ref, bc_ref, out_ref, *,
                  nsample, gather_dtype, exact_argmin):
    x1 = x1_ref[0]                    # [TN1, 3]  channel-last coords
    x2t = x2t_ref[0]                  # [3, N2]   native NCW coords
    f1 = f1_ref[0].T                  # [C, TN1] -> [TN1, C] (one small XLU transpose)
    g2 = g2_ref[0]                    # [N2, D]   precomputed f2 W2 + b2 + x2 Wpos

    tn1 = x1.shape[0]
    n2 = x2t.shape[-1]
    d_out = w1_ref.shape[-1]

    # Per-tile N1-side precompute (algebraically fused):
    #   val_k = onehot_k @ g2 + base,  base = f1 W1 - x1 Wpos + (b1 + bpos + bias)
    p1 = jnp.dot(f1, w1_ref[...], preferred_element_type=jnp.float32)
    x1pos = jnp.dot(x1, wpos_ref[...], preferred_element_type=jnp.float32)
    base = p1 - x1pos + bc_ref[...]                                    # [TN1, D]

    sq1 = jnp.sum(x1 * x1, axis=-1, keepdims=True)                     # [TN1, 1]
    dist0 = sq1 + sq2_ref[0] - 2.0 * jnp.dot(
        x1, x2t, preferred_element_type=jnp.float32)                   # [TN1, N2]

    col = lax.broadcasted_iota(jnp.int32, (tn1, n2), 1)
    leak = jnp.float32(LEAKY_RATE)
    acc0 = jnp.full((tn1, d_out), -jnp.inf, dtype=jnp.float32)

    def leaky_max(acc, sel):
        gathered = jnp.dot(sel.astype(gather_dtype), g2,
                           preferred_element_type=jnp.float32)          # MXU gather
        val = gathered + base
        return jnp.maximum(acc, jnp.where(val > 0, val, leak * val))    # LeakyReLU+max

    if exact_argmin:
        # Bit-exact lowest-index tie-break (two cross-lane reductions per step).
        big = jnp.float32(1e30)

        def body(_, carry):
            dist, acc = carry
            dmin = jnp.min(dist, axis=-1, keepdims=True)
            idx = jnp.min(jnp.where(dist <= dmin, col, n2), axis=-1, keepdims=True)
            sel = col == idx
            acc = leaky_max(acc, sel)
            return jnp.where(sel, big, dist), acc

        carry0 = (dist0, acc0)
    else:
        # Index-packed argmin: clear the low ceil(log2(N2)) mantissa bits of the
        # (non-negative) distance and OR in the column index.  One float min per
        # step then yields both the min distance and the lowest-index tie-break.
        nbits = max(1, (n2 - 1).bit_length())
        lowmask = jnp.int32((1 << nbits) - 1)
        keep = jnp.int32(~((1 << nbits) - 1))
        # Clamp away zeros/denormals so float ordering == bit-pattern ordering.
        bits = pltpu.bitcast(jnp.maximum(dist0, jnp.float32(1e-30)), jnp.int32)
        packed0 = pltpu.bitcast((bits & keep) | col, jnp.float32)
        masked = jnp.float32(3.0e38)

        def body(_, carry):
            packed, acc = carry
            pmin = jnp.min(packed, axis=-1, keepdims=True)              # 1 XLU reduce
            idx = pltpu.bitcast(pmin, jnp.int32) & lowmask              # [TN1, 1]
            sel = col == idx                                            # one-hot
            acc = leaky_max(acc, sel)
            return jnp.where(sel, masked, packed), acc                  # mask neighbor

        carry0 = (packed0, acc0)

    # fori_loop (not a Python for) bounds the [TN1,N2] live ranges; unroll=2 lets
    # the scheduler hide step k's gather matmul under step k+1's argmin.
    unroll = True if nsample <= 4 else 2
    _, acc = lax.fori_loop(0, nsample, body, carry0, unroll=unroll)

    # Lane-dense store directly in PyTorch NCW layout: [D, TN1].
    out_ref[0] = acc.T


def cross_pallas(xyz1, xyz2_ncw, feat1_ncw, feat2_ncw, lp, nsample, *,
                 tile_n1=None, gather_dtype=jnp.float32, exact_argmin=False):
    """One `cross` call.

    xyz1      : [B, N1, 3]  channel-last (transposed once per module forward)
    xyz2_ncw  : [B, 3, N2]  native PyTorch layout
    feat*_ncw : [B, C, N*]  native PyTorch layout (== this kernel's output layout)
    returns   : [B, D, N1]  PyTorch NCW layout (lane-dense stores)

    gather_dtype=jnp.bfloat16 speeds up the one-hot gather matmul on v6e/v7x
    (one-hot is exact in bf16; only g2 rounding) when ~1e-2 tolerance is OK.
    """
    b, n1, _ = xyz1.shape
    _, _, n2 = xyz2_ncw.shape
    c_in = feat1_ncw.shape[1]
    d_out = lp["w1"].shape[-1]
    if nsample > n2:
        raise ValueError(f"nsample={nsample} exceeds number of points n2={n2}")

    gather_bytes = jnp.dtype(gather_dtype).itemsize
    vmem_cap = _vmem_capacity_bytes()
    tn1 = tile_n1 if tile_n1 is not None else _pick_tile_n1(
        n1, n2, c_in, d_out, gather_bytes, vmem_cap)
    tn1 = min(tn1, n1)
    if tn1 < n1 and tn1 % 128 != 0:
        raise ValueError("tile_n1 must be a multiple of 128 (lane-dense output) "
                         "or cover all of N1")
    num_tiles = pl.cdiv(n1, tn1)

    # N2-side precompute stays in XLA (runs once per call, not per N1 tile, and
    # keeps feat2/xyz2(NWC)/w2/b2 out of the kernel's VMEM):
    #   g2 = f2 W2 + b2 + x2 Wpos        [B, N2, D]
    g2 = (jnp.einsum("bcn,cd->bnd", feat2_ncw, lp["w2"]) + lp["b2"]
          + jnp.einsum("bcn,cd->bnd", xyz2_ncw, lp["wpos"])).astype(gather_dtype)
    sq2 = jnp.sum(xyz2_ncw * xyz2_ncw, axis=1, keepdims=True)           # [B, 1, N2]
    bconst = lp["b1"] + lp["bpos"] + lp["bias"]                         # [1, D]

    kernel = functools.partial(_cross_kernel, nsample=nsample,
                               gather_dtype=gather_dtype,
                               exact_argmin=exact_argmin)
    vmem_limit = int(min(vmem_cap * 7 // 8, vmem_cap - 8 * _MIB))

    return pl.pallas_call(
        kernel,
        out_shape=jax.ShapeDtypeStruct((b, d_out, n1), jnp.float32),
        grid=(b, num_tiles),
        in_specs=[
            pl.BlockSpec((1, tn1, 3), lambda i, j: (i, j, 0)),        # xyz1 tile
            pl.BlockSpec((1, 3, n2), lambda i, j: (i, 0, 0)),         # xyz2 (NCW)
            pl.BlockSpec((1, c_in, tn1), lambda i, j: (i, 0, j)),     # feat1 tile (NCW)
            pl.BlockSpec((1, n2, d_out), lambda i, j: (i, 0, 0)),     # g2
            pl.BlockSpec((1, 1, n2), lambda i, j: (i, 0, 0)),         # |x2|^2
            pl.BlockSpec((c_in, d_out), lambda i, j: (0, 0)),         # w1
            pl.BlockSpec((3, d_out), lambda i, j: (0, 0)),            # wpos
            pl.BlockSpec((1, d_out), lambda i, j: (0, 0)),            # b1+bpos+bias
        ],
        out_specs=pl.BlockSpec((1, d_out, tn1), lambda i, j: (i, 0, j)),
        compiler_params=pltpu.CompilerParams(
            # No scratch carry remains, so both grid axes are independent:
            # batch AND N1 tiles shard across v7x's two TensorCores.
            dimension_semantics=("parallel", "parallel"),
            vmem_limit_bytes=vmem_limit,
        ),
    )(xyz1, xyz2_ncw, feat1_ncw, g2, sq2, lp["w1"], lp["wpos"], bconst)


# ----------------------------------------------------------------------------
# Pure-JAX reference of `cross` (same interface/output layout; correctness only).
# ----------------------------------------------------------------------------
def cross_ref(xyz1, xyz2_ncw, feat1_ncw, feat2_ncw, lp, nsample):
    xyz2 = jnp.transpose(xyz2_ncw, (0, 2, 1))
    feat1 = jnp.transpose(feat1_ncw, (0, 2, 1))
    feat2 = jnp.transpose(feat2_ncw, (0, 2, 1))
    p1 = feat1 @ lp["w1"] + lp["b1"]                                     # [B,N1,D]
    p2 = feat2 @ lp["w2"] + lp["b2"]                                     # [B,N2,D]
    d = (jnp.sum(xyz1 ** 2, -1, keepdims=True)
         + jnp.sum(xyz2 ** 2, -1)[:, None, :]
         - 2.0 * jnp.einsum("bnc,bmc->bnm", xyz1, xyz2))                 # [B,N1,N2]
    _, idx = lax.top_k(-d, nsample)                                      # [B,N1,K]
    nbr_xyz = jax.vmap(lambda x, i: x[i])(xyz2, idx)                     # [B,N1,K,3]
    nbr_feat = jax.vmap(lambda x, i: x[i])(p2, idx)                      # [B,N1,K,D]
    direction = nbr_xyz - xyz1[:, :, None, :]
    pos_out = direction @ lp["wpos"] + lp["bpos"]
    val = nbr_feat + p1[:, :, None, :] + pos_out + lp["bias"]
    act = jnp.where(val > 0, val, LEAKY_RATE * val)
    return jnp.transpose(jnp.max(act, axis=2), (0, 2, 1))                # [B,D,N1]


# ----------------------------------------------------------------------------
# Module forward (mirrors CrossLayerPoolLight.forward).  Features stay in NCW
# end-to-end; only the coordinates are transposed, once, outside the loops.
# ----------------------------------------------------------------------------
def cross_layer_pool_light_forward(pc1, pc2, feat1, feat2, params1, params2,
                                   nsample, use_pallas=True):
    """pc*: [B,3,N], feat*: [B,C,N] (PyTorch layout). Returns [B,D,N] tensors."""
    cross_fn = cross_pallas if use_pallas else cross_ref
    x1 = jnp.transpose(pc1, (0, 2, 1))        # [B, N1, 3]  (layer-invariant)
    x2 = jnp.transpose(pc2, (0, 2, 1))        # [B, N2, 3]
    f1, f2 = feat1, feat2                      # features stay NCW

    for lp in params1:
        o1 = cross_fn(x1, pc2, f1, f2, lp, nsample)   # [B, D, N1]
        o2 = cross_fn(x2, pc1, f2, f1, lp, nsample)   # [B, D, N2]  (roles swapped)
        f1, f2 = o1, o2

    if params2 is None:
        return f1, f2

    f1f = f1
    for lp in params2:
        f1f = cross_fn(x1, pc2, f1f, f2, lp, nsample)

    return f1, f2, f1f


# ----------------------------------------------------------------------------
# Deterministic parameter init (shapes from __init__; synthetic, no checkpoint).
# ----------------------------------------------------------------------------
def init_layer(key, in_ch, out_ch):
    ks = jax.random.split(key, 7)
    s = 0.1
    return dict(
        w1=jax.random.normal(ks[0], (in_ch, out_ch), jnp.float32) * s,   # Conv1d cross*_1
        b1=jax.random.normal(ks[1], (1, out_ch), jnp.float32) * s,
        w2=jax.random.normal(ks[2], (in_ch, out_ch), jnp.float32) * s,   # Conv1d cross*_2
        b2=jax.random.normal(ks[3], (1, out_ch), jnp.float32) * s,
        wpos=jax.random.normal(ks[4], (3, out_ch), jnp.float32) * s,     # Conv2d pos (3->out)
        bpos=jax.random.normal(ks[5], (1, out_ch), jnp.float32) * s,
        bias=jax.random.normal(ks[6], (1, out_ch), jnp.float32),         # bias* ~ randn
    )


if __name__ == "__main__":
    key = jax.random.PRNGKey(0)
    B, N, C_IN, NSAMPLE = 2, 16, 8, 4
    MLP1, MLP2 = [16, 16], [16]

    k_pc1, k_pc2, k_f1, k_f2, k_p = jax.random.split(key, 5)
    pc1 = jax.random.normal(k_pc1, (B, 3, N), jnp.float32)
    pc2 = jax.random.normal(k_pc2, (B, 3, N), jnp.float32)
    feat1 = jax.random.normal(k_f1, (B, C_IN, N), jnp.float32)
    feat2 = jax.random.normal(k_f2, (B, C_IN, N), jnp.float32)

    pkeys = jax.random.split(k_p, len(MLP1) + len(MLP2))
    params1, last = [], C_IN
    for i, oc in enumerate(MLP1):
        params1.append(init_layer(pkeys[i], last, oc))
        last = oc
    params2 = []
    for j, oc in enumerate(MLP2):
        params2.append(init_layer(pkeys[len(MLP1) + j], last, oc))
        last = oc

    # 1) Main check: full module forward, Pallas (packed argmin, f32 gather)
    #    vs pure-JAX reference.
    outs = cross_layer_pool_light_forward(pc1, pc2, feat1, feat2,
                                          params1, params2, NSAMPLE, use_pallas=True)
    outs = jax.block_until_ready(outs)
    refs = cross_layer_pool_light_forward(pc1, pc2, feat1, feat2,
                                          params1, params2, NSAMPLE, use_pallas=False)
    for o, r in zip(outs, refs):
        np.testing.assert_allclose(np.asarray(o), np.asarray(r), atol=2e-3, rtol=2e-3)

    # 2) Exact-argmin fallback path (bit-exact lowest-index tie-break).
    x1nwc = jnp.transpose(pc1, (0, 2, 1))
    r_ref = cross_ref(x1nwc, pc2, feat1, feat2, params1[0], NSAMPLE)
    o_exact = cross_pallas(x1nwc, pc2, feat1, feat2, params1[0], NSAMPLE,
                           exact_argmin=True)
    o_exact = jax.block_until_ready(o_exact)
    np.testing.assert_allclose(np.asarray(o_exact), np.asarray(r_ref),
                               atol=2e-3, rtol=2e-3)

    # 3) bf16 gather path (one-hot exact in bf16; only g2 rounding) -> looser tol.
    o_bf16 = cross_pallas(x1nwc, pc2, feat1, feat2, params1[0], NSAMPLE,
                          gather_dtype=jnp.bfloat16)
    o_bf16 = jax.block_until_ready(o_bf16)
    np.testing.assert_allclose(np.asarray(o_bf16), np.asarray(r_ref),
                               atol=2e-2, rtol=2e-2)

    # 4) Multi-tile grid path: per-row math is row-local, so tiled == single-tile.
    kt = jax.random.split(jax.random.PRNGKey(1), 5)
    N1B, N2B, CB, DB = 256, 64, 8, 16
    x1b = jax.random.normal(kt[0], (B, N1B, 3), jnp.float32)
    x2b = jax.random.normal(kt[1], (B, 3, N2B), jnp.float32)
    f1b = jax.random.normal(kt[2], (B, CB, N1B), jnp.float32)
    f2b = jax.random.normal(kt[3], (B, CB, N2B), jnp.float32)
    lpb = init_layer(kt[4], CB, DB)
    tiled = cross_pallas(x1b, x2b, f1b, f2b, lpb, NSAMPLE, tile_n1=128)
    whole = cross_pallas(x1b, x2b, f1b, f2b, lpb, NSAMPLE, tile_n1=256)
    tiled, whole = jax.block_until_ready((tiled, whole))
    np.testing.assert_allclose(np.asarray(tiled), np.asarray(whole),
                               atol=1e-5, rtol=1e-5)

    print("KERNEL_OK")
</pallas_src>

<mosaic_0001>
module attributes {stable_mosaic.version = 11 : i64} {
  func.func @_cross_kernel(%arg0: i32, %arg1: i32, %arg2: memref<1x16x3xf32, #tpu.memory_space<vmem>>, %arg3: memref<1x3x16xf32, #tpu.memory_space<vmem>>, %arg4: memref<1x8x16xf32, #tpu.memory_space<vmem>>, %arg5: memref<1x16x16xf32, #tpu.memory_space<vmem>>, %arg6: memref<1x1x16xf32, #tpu.memory_space<vmem>>, %arg7: memref<8x16xf32, #tpu.memory_space<vmem>>, %arg8: memref<3x16xf32, #tpu.memory_space<vmem>>, %arg9: memref<1x16xf32, #tpu.memory_space<vmem>>, %arg10: memref<1x16x16xf32, #tpu.memory_space<vmem>>) attributes {dimension_semantics = [#tpu.dimension_semantics<parallel>, #tpu.dimension_semantics<parallel>], iteration_bounds = array<i64: 2, 1>, scalar_prefetch = 0 : i64, scratch_operands = 0 : i64, tpu.core_type = #tpu.core_type<tc>, window_params = [{transform_indices = @transform_0, window_bounds = array<i64: 1, 16, 3>}, {transform_indices = @transform_1, window_bounds = array<i64: 1, 3, 16>}, {transform_indices = @transform_2, window_bounds = array<i64: 1, 8, 16>}, {transform_indices = @transform_3, window_bounds = array<i64: 1, 16, 16>}, {transform_indices = @transform_4, window_bounds = array<i64: 1, 1, 16>}, {pipeline_mode = #tpu.pipeline_mode<synchronous>, transform_indices = @transform_5, window_bounds = array<i64: 8, 16>}, {pipeline_mode = #tpu.pipeline_mode<synchronous>, transform_indices = @transform_6, window_bounds = array<i64: 3, 16>}, {pipeline_mode = #tpu.pipeline_mode<synchronous>, transform_indices = @transform_7, window_bounds = array<i64: 1, 16>}, {transform_indices = @transform_8, window_bounds = array<i64: 1, 16, 16>}]} {
    %c0 = arith.constant 0 : index
    %c0_0 = arith.constant 0 : index
    %c0_1 = arith.constant 0 : index
    %0 = vector.load %arg2[%c0, %c0_0, %c0_1] : memref<1x16x3xf32, #tpu.memory_space<vmem>>, vector<1x16x3xf32>
    %1 = vector.shape_cast %0 : vector<1x16x3xf32> to vector<16x3xf32>
    %c0_2 = arith.constant 0 : index
    %c0_3 = arith.constant 0 : index
    %c0_4 = arith.constant 0 : index
    %2 = vector.load %arg3[%c0_2, %c0_3, %c0_4] : memref<1x3x16xf32, #tpu.memory_space<vmem>>, vector<1x3x16xf32>
    %3 = vector.shape_cast %2 : vector<1x3x16xf32> to vector<3x16xf32>
    %c0_5 = arith.constant 0 : index
    %c0_6 = arith.constant 0 : index
    %c0_7 = arith.constant 0 : index
    %4 = vector.load %arg4[%c0_5, %c0_6, %c0_7] : memref<1x8x16xf32, #tpu.memory_space<vmem>>, vector<1x8x16xf32>
    %5 = vector.shape_cast %4 : vector<1x8x16xf32> to vector<8x16xf32>
    %6 = tpu.transpose %5, [1, 0] : vector<8x16xf32> -> vector<16x8xf32>
    %c0_8 = arith.constant 0 : index
    %c0_9 = arith.constant 0 : index
    %c0_10 = arith.constant 0 : index
    %7 = vector.load %arg5[%c0_8, %c0_9, %c0_10] : memref<1x16x16xf32, #tpu.memory_space<vmem>>, vector<1x16x16xf32>
    %8 = vector.shape_cast %7 : vector<1x16x16xf32> to vector<16x16xf32>
    %c0_11 = arith.constant 0 : index
    %c0_12 = arith.constant 0 : index
    %9 = vector.load %arg7[%c0_11, %c0_12] : memref<8x16xf32, #tpu.memory_space<vmem>>, vector<8x16xf32>
    %cst = arith.constant dense<0.000000e+00> : vector<16x16xf32>
    %10 = tpu.matmul %6, %9, %cst {dimension_numbers = #tpu.dot_dimension_numbers<[1], [0], [0], [1], [0, 0, 1, 1], [], []>} : vector<16x8xf32>, vector<8x16xf32>, vector<16x16xf32> -> vector<16x16xf32>
    %c0_13 = arith.constant 0 : index
    %c0_14 = arith.constant 0 : index
    %11 = vector.load %arg8[%c0_13, %c0_14] : memref<3x16xf32, #tpu.memory_space<vmem>>, vector<3x16xf32>
    %cst_15 = arith.constant dense<0.000000e+00> : vector<16x16xf32>
    %12 = tpu.matmul %1, %11, %cst_15 {dimension_numbers = #tpu.dot_dimension_numbers<[1], [0], [0], [1], [0, 0, 1, 1], [], []>} : vector<16x3xf32>, vector<3x16xf32>, vector<16x16xf32> -> vector<16x16xf32>
    %13 = arith.subf %10, %12 : vector<16x16xf32>
    %c0_16 = arith.constant 0 : index
    %c0_17 = arith.constant 0 : index
    %14 = vector.load %arg9[%c0_16, %c0_17] : memref<1x16xf32, #tpu.memory_space<vmem>>, vector<1x16xf32>
    %15 = vector.broadcast %14 : vector<1x16xf32> to vector<16x16xf32>
    %16 = arith.addf %13, %15 : vector<16x16xf32>
    %17 = arith.mulf %1, %1 : vector<16x3xf32>
    %cst_18 = arith.constant dense<0.000000e+00> : vector<16xf32>
    %18 = vector.multi_reduction <add>, %17, %cst_18 [1] : vector<16x3xf32> to vector<16xf32>
    %19 = vector.shape_cast %18 : vector<16xf32> to vector<16x1xf32>
    %c0_19 = arith.constant 0 : index
    %c0_20 = arith.constant 0 : index
    %c0_21 = arith.constant 0 : index
    %20 = vector.load %arg6[%c0_19, %c0_20, %c0_21] : memref<1x1x16xf32, #tpu.memory_space<vmem>>, vector<1x1x16xf32>
    %21 = vector.shape_cast %20 : vector<1x1x16xf32> to vector<1x16xf32>
    %22 = vector.broadcast %19 : vector<16x1xf32> to vector<16x16xf32>
    %23 = vector.broadcast %21 : vector<1x16xf32> to vector<16x16xf32>
    %24 = arith.addf %22, %23 : vector<16x16xf32>
    %cst_22 = arith.constant dense<0.000000e+00> : vector<16x16xf32>
    %25 = tpu.matmul %1, %3, %cst_22 {dimension_numbers = #tpu.dot_dimension_numbers<[1], [0], [0], [1], [0, 0, 1, 1], [], []>} : vector<16x3xf32>, vector<3x16xf32>, vector<16x16xf32> -> vector<16x16xf32>
    %cst_23 = arith.constant 2.000000e+00 : f32
    %26 = vector.broadcast %cst_23 : f32 to vector<16x16xf32>
    %27 = arith.mulf %26, %25 : vector<16x16xf32>
    %28 = arith.subf %24, %27 : vector<16x16xf32>
    %29 = tpu.iota {dimensions = array<i32: 1>} : vector<16x16xi32>
    %cst_24 = arith.constant 0xFF800000 : f32
    %30 = vector.broadcast %cst_24 : f32 to vector<16x16xf32>
    %cst_25 = arith.constant 1.000000e-30 : f32
    %31 = vector.broadcast %cst_25 : f32 to vector<16x16xf32>
    %32 = arith.maximumf %28, %31 : vector<16x16xf32>
    %33 = tpu.bitcast %32 : vector<16x16xf32> -> vector<16x16xi32>
    %c-16_i32 = arith.constant -16 : i32
    %34 = vector.broadcast %c-16_i32 : i32 to vector<16x16xi32>
    %35 = arith.andi %33, %34 : vector<16x16xi32>
    %36 = arith.ori %35, %29 : vector<16x16xi32>
    %37 = tpu.bitcast %36 : vector<16x16xi32> -> vector<16x16xf32>
    %c15_i32 = arith.constant 15 : i32
    %cst_26 = arith.constant 1.000000e-01 : f32
    %cst_27 = arith.constant 3.000000e+38 : f32
    %c0_i32 = arith.constant 0 : i32
    %cst_28 = arith.constant dense<0x7F800000> : vector<16xf32>
    %38 = vector.multi_reduction <minimumf>, %37, %cst_28 [1] : vector<16x16xf32> to vector<16xf32>
    %39 = vector.shape_cast %38 : vector<16xf32> to vector<16x1xf32>
    %40 = tpu.bitcast %39 : vector<16x1xf32> -> vector<16x1xi32>
    %41 = vector.broadcast %c15_i32 : i32 to vector<16x1xi32>
    %42 = arith.andi %40, %41 : vector<16x1xi32>
    %43 = vector.broadcast %42 : vector<16x1xi32> to vector<16x16xi32>
    %44 = arith.cmpi eq, %29, %43 : vector<16x16xi32>
    %45 = arith.extui %44 : vector<16x16xi1> to vector<16x16xi32>
    %46 = arith.sitofp %45 : vector<16x16xi32> to vector<16x16xf32>
    %cst_29 = arith.constant dense<0.000000e+00> : vector<16x16xf32>
    %47 = tpu.matmul %46, %8, %cst_29 {dimension_numbers = #tpu.dot_dimension_numbers<[1], [0], [0], [1], [0, 0, 1, 1], [], []>} : vector<16x16xf32>, vector<16x16xf32>, vector<16x16xf32> -> vector<16x16xf32>
    %48 = arith.addf %47, %16 : vector<16x16xf32>
    %cst_30 = arith.constant 0.000000e+00 : f32
    %49 = vector.broadcast %cst_30 : f32 to vector<16x16xf32>
    %50 = arith.cmpf ogt, %48, %49 : vector<16x16xf32>
    %51 = vector.broadcast %cst_26 : f32 to vector<16x16xf32>
    %52 = arith.mulf %51, %48 : vector<16x16xf32>
    %53 = arith.select %50, %48, %52 : vector<16x16xi1>, vector<16x16xf32>
    %54 = arith.maximumf %30, %53 : vector<16x16xf32>
    %55 = vector.broadcast %cst_27 : f32 to vector<16x16xf32>
    %56 = arith.select %44, %55, %37 : vector<16x16xi1>, vector<16x16xf32>
    %c1_i32 = arith.constant 1 : i32
    %cst_31 = arith.constant dense<0x7F800000> : vector<16xf32>
    %57 = vector.multi_reduction <minimumf>, %56, %cst_31 [1] : vector<16x16xf32> to vector<16xf32>
    %58 = vector.shape_cast %57 : vector<16xf32> to vector<16x1xf32>
    %59 = tpu.bitcast %58 : vector<16x1xf32> -> vector<16x1xi32>
    %60 = vector.broadcast %c15_i32 : i32 to vector<16x1xi32>
    %61 = arith.andi %59, %60 : vector<16x1xi32>
    %62 = vector.broadcast %61 : vector<16x1xi32> to vector<16x16xi32>
    %63 = arith.cmpi eq, %29, %62 : vector<16x16xi32>
    %64 = arith.extui %63 : vector<16x16xi1> to vector<16x16xi32>
    %65 = arith.sitofp %64 : vector<16x16xi32> to vector<16x16xf32>
    %cst_32 = arith.constant dense<0.000000e+00> : vector<16x16xf32>
    %66 = tpu.matmul %65, %8, %cst_32 {dimension_numbers = #tpu.dot_dimension_numbers<[1], [0], [0], [1], [0, 0, 1, 1], [], []>} : vector<16x16xf32>, vector<16x16xf32>, vector<16x16xf32> -> vector<16x16xf32>
    %67 = arith.addf %66, %16 : vector<16x16xf32>
    %cst_33 = arith.constant 0.000000e+00 : f32
    %68 = vector.broadcast %cst_33 : f32 to vector<16x16xf32>
    %69 = arith.cmpf ogt, %67, %68 : vector<16x16xf32>
    %70 = vector.broadcast %cst_26 : f32 to vector<16x16xf32>
    %71 = arith.mulf %70, %67 : vector<16x16xf32>
    %72 = arith.select %69, %67, %71 : vector<16x16xi1>, vector<16x16xf32>
    %73 = arith.maximumf %54, %72 : vector<16x16xf32>
    %74 = vector.broadcast %cst_27 : f32 to vector<16x16xf32>
    %75 = arith.select %63, %74, %56 : vector<16x16xi1>, vector<16x16xf32>
    %c2_i32 = arith.constant 2 : i32
    %cst_34 = arith.constant dense<0x7F800000> : vector<16xf32>
    %76 = vector.multi_reduction <minimumf>, %75, %cst_34 [1] : vector<16x16xf32> to vector<16xf32>
    %77 = vector.shape_cast %76 : vector<16xf32> to vector<16x1xf32>
    %78 = tpu.bitcast %77 : vector<16x1xf32> -> vector<16x1xi32>
    %79 = vector.broadcast %c15_i32 : i32 to vector<16x1xi32>
    %80 = arith.andi %78, %79 : vector<16x1xi32>
    %81 = vector.broadcast %80 : vector<16x1xi32> to vector<16x16xi32>
    %82 = arith.cmpi eq, %29, %81 : vector<16x16xi32>
    %83 = arith.extui %82 : vector<16x16xi1> to vector<16x16xi32>
    %84 = arith.sitofp %83 : vector<16x16xi32> to vector<16x16xf32>
    %cst_35 = arith.constant dense<0.000000e+00> : vector<16x16xf32>
    %85 = tpu.matmul %84, %8, %cst_35 {dimension_numbers = #tpu.dot_dimension_numbers<[1], [0], [0], [1], [0, 0, 1, 1], [], []>} : vector<16x16xf32>, vector<16x16xf32>, vector<16x16xf32> -> vector<16x16xf32>
    %86 = arith.addf %85, %16 : vector<16x16xf32>
    %cst_36 = arith.constant 0.000000e+00 : f32
    %87 = vector.broadcast %cst_36 : f32 to vector<16x16xf32>
    %88 = arith.cmpf ogt, %86, %87 : vector<16x16xf32>
    %89 = vector.broadcast %cst_26 : f32 to vector<16x16xf32>
    %90 = arith.mulf %89, %86 : vector<16x16xf32>
    %91 = arith.select %88, %86, %90 : vector<16x16xi1>, vector<16x16xf32>
    %92 = arith.maximumf %73, %91 : vector<16x16xf32>
    %93 = vector.broadcast %cst_27 : f32 to vector<16x16xf32>
    %94 = arith.select %82, %93, %75 : vector<16x16xi1>, vector<16x16xf32>
    %c3_i32 = arith.constant 3 : i32
    %cst_37 = arith.constant dense<0x7F800000> : vector<16xf32>
    %95 = vector.multi_reduction <minimumf>, %94, %cst_37 [1] : vector<16x16xf32> to vector<16xf32>
    %96 = vector.shape_cast %95 : vector<16xf32> to vector<16x1xf32>
    %97 = tpu.bitcast %96 : vector<16x1xf32> -> vector<16x1xi32>
    %98 = vector.broadcast %c15_i32 : i32 to vector<16x1xi32>
    %99 = arith.andi %97, %98 : vector<16x1xi32>
    %100 = vector.broadcast %99 : vector<16x1xi32> to vector<16x16xi32>
    %101 = arith.cmpi eq, %29, %100 : vector<16x16xi32>
    %102 = arith.extui %101 : vector<16x16xi1> to vector<16x16xi32>
    %103 = arith.sitofp %102 : vector<16x16xi32> to vector<16x16xf32>
    %cst_38 = arith.constant dense<0.000000e+00> : vector<16x16xf32>
    %104 = tpu.matmul %103, %8, %cst_38 {dimension_numbers = #tpu.dot_dimension_numbers<[1], [0], [0], [1], [0, 0, 1, 1], [], []>} : vector<16x16xf32>, vector<16x16xf32>, vector<16x16xf32> -> vector<16x16xf32>
    %105 = arith.addf %104, %16 : vector<16x16xf32>
    %cst_39 = arith.constant 0.000000e+00 : f32
    %106 = vector.broadcast %cst_39 : f32 to vector<16x16xf32>
    %107 = arith.cmpf ogt, %105, %106 : vector<16x16xf32>
    %108 = vector.broadcast %cst_26 : f32 to vector<16x16xf32>
    %109 = arith.mulf %108, %105 : vector<16x16xf32>
    %110 = arith.select %107, %105, %109 : vector<16x16xi1>, vector<16x16xf32>
    %111 = arith.maximumf %92, %110 : vector<16x16xf32>
    %112 = vector.broadcast %cst_27 : f32 to vector<16x16xf32>
    %113 = arith.select %101, %112, %94 : vector<16x16xi1>, vector<16x16xf32>
    %114 = tpu.transpose %111, [1, 0] : vector<16x16xf32> -> vector<16x16xf32>
    %c0_40 = arith.constant 0 : index
    %c0_41 = arith.constant 0 : index
    %c0_42 = arith.constant 0 : index
    %115 = vector.load %arg10[%c0_40, %c0_41, %c0_42] : memref<1x16x16xf32, #tpu.memory_space<vmem>>, vector<1x16x16xf32>
    %116 = vector.shape_cast %115 : vector<1x16x16xf32> to vector<16x16xf32>
    %117 = vector.shape_cast %114 : vector<16x16xf32> to vector<1x16x16xf32>
    tpu.vector_store %arg10[%c0_40, %c0_41, %c0_42], %117 {strides = array<i32>} : memref<1x16x16xf32, #tpu.memory_space<vmem>>, vector<1x16x16xf32>,
    return
  }
  func.func @transform_0(%arg0: i32, %arg1: i32) -> (i32, i32, i32) {
    %c0_i32 = arith.constant 0 : i32
    %c0_i32_0 = arith.constant 0 : i32
    return %arg0, %arg1, %c0_i32 : i32, i32, i32
  }
  func.func @transform_1(%arg0: i32, %arg1: i32) -> (i32, i32, i32) {
    %c0_i32 = arith.constant 0 : i32
    %c0_i32_0 = arith.constant 0 : i32
    %c0_i32_1 = arith.constant 0 : i32
    return %arg0, %c0_i32, %c0_i32_0 : i32, i32, i32
  }
  func.func @transform_2(%arg0: i32, %arg1: i32) -> (i32, i32, i32) {
    %c0_i32 = arith.constant 0 : i32
    %c0_i32_0 = arith.constant 0 : i32
    return %arg0, %c0_i32, %arg1 : i32, i32, i32
  }
  func.func @transform_3(%arg0: i32, %arg1: i32) -> (i32, i32, i32) {
    %c0_i32 = arith.constant 0 : i32
    %c0_i32_0 = arith.constant 0 : i32
    %c0_i32_1 = arith.constant 0 : i32
    return %arg0, %c0_i32, %c0_i32_0 : i32, i32, i32
  }
  func.func @transform_4(%arg0: i32, %arg1: i32) -> (i32, i32, i32) {
    %c0_i32 = arith.constant 0 : i32
    %c0_i32_0 = arith.constant 0 : i32
    %c0_i32_1 = arith.constant 0 : i32
    return %arg0, %c0_i32, %c0_i32_0 : i32, i32, i32
  }
  func.func @transform_5(%arg0: i32, %arg1: i32) -> (i32, i32) {
    %c0_i32 = arith.constant 0 : i32
    %c0_i32_0 = arith.constant 0 : i32
    %c0_i32_1 = arith.constant 0 : i32
    return %c0_i32, %c0_i32_0 : i32, i32
  }
  func.func @transform_6(%arg0: i32, %arg1: i32) -> (i32, i32) {
    %c0_i32 = arith.constant 0 : i32
    %c0_i32_0 = arith.constant 0 : i32
    %c0_i32_1 = arith.constant 0 : i32
    return %c0_i32, %c0_i32_0 : i32, i32
  }
  func.func @transform_7(%arg0: i32, %arg1: i32) -> (i32, i32) {
    %c0_i32 = arith.constant 0 : i32
    %c0_i32_0 = arith.constant 0 : i32
    %c0_i32_1 = arith.constant 0 : i32
    return %c0_i32, %c0_i32_0 : i32, i32
  }
  func.func @transform_8(%arg0: i32, %arg1: i32) -> (i32, i32, i32) {
    %c0_i32 = arith.constant 0 : i32
    %c0_i32_0 = arith.constant 0 : i32
    return %arg0, %c0_i32, %arg1 : i32, i32, i32
  }
}

</mosaic_0001>

<bundles_post_ra>
// kernel: tpu_custom_call.1
= control target key start
LH: loop header
LB: loop body
LE: loop exit
PB: predicated region body
PF: predicated region fallthrough
CT: control target
= control target key end

     0   :  { %13 = vsyncpa [#allocation3], 0  ;;  %s1500_s0 = inlined_call_operand.vmem [shape: f32[2,16,3], index: 0, kind: input, shape index: {}]   ;;  %s1501_s1 = inlined_call_operand.vmem [shape: f32[2,3,16], index: 1, kind: input, shape index: {}]   ;;  %s1502_s2 = inlined_call_operand.hbm [shape: f32[2,8,16], index: 2, kind: input, shape index: {}]   ;;  %s1503_s3 = inlined_call_operand.vmem [shape: f32[2,16,16], index: 3, kind: input, shape index: {}]   ;;  %s1504_s4 = inlined_call_operand.vmem [shape: f32[2,1,16], index: 4, kind: input, shape index: {}]   ;;  %s1505_s5 = inlined_call_operand.vmem [shape: f32[8,16], index: 5, kind: input, shape index: {}]   ;;  %s1506_s6 = inlined_call_operand.vmem [shape: f32[3,16], index: 6, kind: input, shape index: {}]   ;;  %s1507_s7 = inlined_call_operand.vmem [shape: f32[1,16], index: 7, kind: input, shape index: {}]   ;;  %s1508_s8 = inlined_call_operand.hbm [shape: f32[2,16,16], index: 8, kind: output, shape index: {}]  }
   0x1   :  { %15 = vsyncpa [#allocation3 + $0x1], 0 }
   0x2   :  { %16 = vsyncpa [#allocation4], 0 }
   0x3   :  { %18 = vsyncpa [#allocation4 + $0x1], 0  ;;  %s1274_s27 = smov 0   ;;  %s1276_s28 = smov 0  }
   0x4   :  { %s1278_s29 = smov 0   ;;  %s1280_s30 = smov 0  }
   0x5   :  { %s1282_s9 = smov 0   ;;  %s1284_s10 = smov 0  }
   0x6 LB: > { %s998_s11 = sadd.s32 4294967295, %s1224_s10   ;;  %s999_s12 = sadd.s32 4294967294, %s1224_s10   ;;  %s1224_s10 = sphi %s1284_s10, %s24_s10   ;;  %s1220_s9 = sphi %s1282_s9, %s1528_s9   ;;  %s1216_s30 = sphi %s1280_s30, %s1527_s30   ;;  %s1212_s29 = sphi %s1278_s29, %s1526_s29   ;;  %s1208_s28 = sphi %s1276_s28, %s1525_s28   ;;  %s1204_s27 = sphi %s1274_s27, %s1524_s27  }
   0x7   : > { %s36_s13 = sadd.s32 1, %s1220_s9  ;;  %s99_s14 = sadd.s32 1, %s1212_s29 }
   0x8   : > { %p38_p0 = scmp.ge.s32.totalorder %s36_s13, 2  ;;  %p106_p1 = scmp.ne.s32.totalorder %s1212_s29, %s1208_s28 }
   0x9   : > { %p107_p2 = scmp.eq.s32.totalorder %s1224_s10, 0  ;;  %p112_p3 = scmp.ne.s32.totalorder %s1208_s28, %s1204_s27 }
   0xa   : > { %s1530_s13 = smov (%p38_p0, %s36_s13), 0  ;;  %p113_p5 = scmp.eq.s32.totalorder %s998_s11, 0 }
   0xb   : > { %1510 = sst [smem:[#allocation8_spill]] %s1530_s13  ;;  %p1315_p4 = por %p107_p2, %p106_p1 }
   0xc   : > { %s94_s16 = ssub.s32 %s1220_s9, %s1530_s13  ;;  %p253_p6 = scmp.eq.s32.totalorder %s998_s11, 1 }
   0xd   : > { %p97_p7 = scmp.eq.s32.totalorder %s94_s16, 0  ;;  %p1321_p8 = por %p113_p5, %p112_p3 }
   0xe   : > { %p1325_p9 = por %p253_p6, %p106_p1  ;;  %p259_p10 = scmp.eq.s32.totalorder %s999_s12, 1 }
   0xf   : > { %s1330_s19 = scalar_select %p97_p7, %s1212_s29, %s99_s14  }
  0x10   : > { %p1332_p11 = por %p259_p10, %p112_p3  ;;  %p1001_p12 = scmp.ge.s32.totalorder %s1224_s10, 2 }
  0x11   : > { %p1057_p13 = scmp.lt.s32.totalorder %s1224_s10, 2  ;;  %s308_s21 = sand.u32 1, %s1212_s29  }
  0x12   : > { %s1002_s22 = sshll.u32 %s308_s21, 3  ;;  %s1003_s23 = sshll.u32 %s1220_s9, 3 }
  0x13   : > { %s317_s26 = scalar_lea.hbm %s1502_s2, %s1003_s23  ;;  %s312_s11 = scalar_lea.vmem [#allocation2], %s1002_s22 }
  0x14   : > { %s321_s16 = sshll.u32 %s312_s11, 4  ;;  %s319_s13 = sshll.u32 %s317_s26, 4  ;;  %s322_s16 = int_to_ptr.vmem [resolvable:$true] %s321_s16  ;;  %s320_s13 = int_to_ptr.hbm [resolvable:$true] %s319_s13 }
  0x15   : > { %p1050_p0 = pnand %p1057_p13, %p1315_p4  ;;  %p1004_p1 = scmp.ge.s32.totalorder %s1224_s10, 1 }
  0x16   : > { %p340_p2 = scmp.lt.s32.totalorder %s1224_s10, 3  ;;  %s309_s12 = scalar_lea.sflag [#allocation3], %s308_s21 }
  0x17   : > { %1052 = dma.hbm_to_vmem [thread:$0]  (!%p1050_p0), %s320_s13, 128, %s322_s16, %s309_s12  }
  0x18   : > { %p341_p3 = pnand %p1004_p1, %p340_p2 }
  0x19   : > { %s1348_s14 = sand.u32 (!%p341_p3), 1, %s1208_s28  }
  0x1a   : > { %344 = sbr.rel (%p341_p3) target bundleno = 981 (0x3d5), region = 52  ;;  %s1005_s23 = sshll.u32 (!%p341_p3), %s1348_s14, 3 }
  0x1b   : > { %s347_s22 = scalar_lea.sflag (!%p341_p3), [#allocation3], %s1348_s14  ;;  %s1352_s24 = scalar_lea.vmem (!%p341_p3), [#allocation2], %s1005_s23 }
  0x1f   : > { %1195 = dma.done.wait (%p1321_p8), %s347_s22, 128  }
  0x20   : > { %1197 = vsyncadd (%p1321_p8), %s347_s22, 4294967168  ;;  %p406_p4 = scmp.lt.s32.totalorder %s1216_s30, 1  ;;  %vm504_vm0 = vcmask 1042432   ;;  %vm497_vm1 = vcmask 23552   ;;  %v583_v12 = vlaneseq  ;;  %vm595_vm2 = vcmask 130048   ;;  %v430_v49 = vld [vmem:[%s1352_s24] sm:$0xff] }
  0x21   : > { %v496_v48 = vld [vmem:[%s1506_s6] sm:$0x7]  ;;  %v1226_v54 = vmov 0.0   ;;  %vm466_vm9 = vcmask 64512   ;;  %s1006_s23 = sshll.u32 %s1348_s14, 4  ;;  %s1043_s22 = sshll.u32 %s1216_s30, 4 }
  0x22   : > { %s1360_s13 = scalar_select %p406_p4, %s1216_s30, 1  ;;  %v1381_v16 = vand.u32 127, %v583_v12  ;;  %1014 = vmatpush.msk.msra.mxu1 %vm504_vm0, %v496_v48  ;;  %v465_v63 = vld [vmem:[%s1505_s5] sm:$0xff] }
  0x23   : > { %488 = vmatpush.msra.mxu0 %v465_v63  ;;  %1044 = vmatpush.msra.mxu3 %v465_v63  ;;  %s859_s26 = scalar_lea.hbm %s1508_s8, %s1043_s22  ;;  %s847_s24 = scalar_lea.sflag [#allocation4], %s1348_s14 }
  0x24   : > { %s1009_s15 = sshll.u32 %s1360_s13, 2  ;;  %s1041_s21 = sshll.u32 %s1360_s13, 4 }
  0x25   : > { %s418_s11 = scalar_lea.vmem %s1501_s1, %s1009_s15  ;;  %s413_s12 = scalar_lea.vmem %s1500_s0, %s1041_s21 }
  0x26   : > { %v429_v0 = vld [vmem:[%s418_s11] sm:$0x7]  ;;  %s426_s15 = scalar_lea.vmem %s1504_s4, %s1360_s13  ;;  %v428_v4 = vld [vmem:[%s413_s12 + $0x8] sm:$0xff]  ;;  %s423_s17 = scalar_lea.vmem %s1503_s3, %s1041_s21 }
  0x27   : > { %v427_v1 = vld [vmem:[%s413_s12] sm:$0xff]  ;;  %1017 = vmatpush.msk.msra.mxu2 %vm504_vm0, %v429_v0  ;;  %v540_v5 = vmul.f32 %v428_v4, %v428_v4  ;;  %v464_v50 = vld [vmem:[%s423_s17 + $0x8] sm:$0xff]  ;;  %s404_s11 = scalar_lea.vmem [#allocation5], %s1006_s23  ;;  %s1162_s23 = scalar_lea.hbm %s1508_s8, 32 }
  0x28   : > { %v539_v2 = vmul.f32 %v427_v1, %v427_v1  ;;  %1018 = vmatmul.msk.f32.vlgmr.msra.gmra.mxu2 %vm497_vm1, %v427_v1  ;;  %v1110_v8 = vld [vmem:[%s426_s15] ss:$0 sm:$0xff]  ;;  %1015 = vmatmul.msk.f32.vlgmr.msra.gmra.mxu1 %vm497_vm1, %v427_v1  ;;  %s860_s16 = sshll.u32 %s404_s11, 4  ;;  %s861_s16 = int_to_ptr.vmem [resolvable:$true] %s860_s16 }
  0x29   : > { %v544_v6 = vsel %vm497_vm1, %v540_v5, 0.0  ;;  %740 = vmatpush.msrb.mxu1 %v464_v50  ;;  %795 = vmatpush.msrb.mxu2 %v464_v50  ;;  %v463_v51 = vld [vmem:[%s423_s17] sm:$0xff]  ;;  %s862_s17 = sshll.u32 %s859_s26, 4  ;;  %s863_s17 = int_to_ptr.hbm [resolvable:$true] %s862_s17 }
  0x2a   : > { %v541_v3 = vsel %vm497_vm1, %v539_v2, 0.0  ;;  %685 = vmatpush.msrb.mxu0 %v464_v50  ;;  %632 = vmatpush.msrb.mxu3 %v464_v50  ;;  %s1156_s13 = sshra.s32 %s863_s17, 4  ;;  %s1157_s13 = int_to_ptr.hbm [resolvable:$true] %s1156_s13 }
  0x2b   : > { %542 = vadd.xlane.f32.xlu0 %v541_v3  ;;  %741 = vmatpush.msrb.mxu1 %v463_v51  ;;  %s1158_s30 = scalar_lea.hbm %s1157_s13, 16  ;;  %p1163_p8 = scmp.lt.s32.totalorder %s1157_s13, %s1508_s8 }
  0x2c   : > { %796 = vmatpush.msrb.mxu2 %v463_v51  ;;  %686 = vmatpush.msrb.mxu0 %v463_v51  ;;  %p1159_p5 = scmp.ne.s32.totalorder %s1157_s13, %s1158_s30  ;;  %p1164_p10 = scmp.lt.s32.totalorder %s1162_s23, %s1158_s30 }
  0x2d   : > { %633 = vmatpush.msrb.mxu3 %v463_v51 }
  0x2e   : > { %p1160_p6 = pnand %p1159_p5, %p1325_p9  ;;  %p1165_p13 = por %p1164_p10, %p1163_p8 }
  0x30   : > { %1019 = vmatmul.msk.f32.gmra.mxu2 %vm497_vm1, %v428_v4  ;;  %1016 = vmatmul.msk.f32.gmra.mxu1 %vm497_vm1, %v428_v4  ;;  %p1161_p7 = pneg %p1160_p6 }
  0x32   : > { %p1166_p0 = pnand %p1165_p13, %p1161_p7 }
  0x33   : > { %545 = vadd.xlane.f32.xlu0 %v544_v6 }
  0x9e   : > { %v543_v7 = vpop.xlane.xlu0 %542 }
  0x9f   : > { %v551_v9 = vadd.f32 %v1110_v8, %v543_v7 }
  0xa5   : > { %v525_v12 = vpop.f32.mrf.mxu1 }
  0xa6   : > { %v546_v14 = vpop.xlane.xlu0 %545 }
  0xa7   : > { %v552_v18 = vadd.f32 %v1110_v8, %v546_v14 }
  0xab   : > { %v573_v10 = vpop.f32.mrf.mxu2 }
  0xac   : > { %v579_v11 = vmul.f32 2.0, %v573_v10 }
  0xad   : > { %v528_v14 = vpop.f32.mrf.mxu1 }
  0xae   : > { %v581_v13 = vsub.f32 %v551_v9, %v579_v11 }
  0xb0   : > { %v585_v15 = vmax.f32 %v581_v13, 1e-30 }
  0xb2   : > { %v589_v17 = vand.u32 4294967280, %v585_v15 }
  0xb3   : > { %v576_v19 = vpop.f32.mrf.mxu2 }
  0xb4   : > { %v580_v20 = vmul.f32 2.0, %v576_v19  ;;  %v591_v21 = vor.u32 %v589_v17, %v1381_v16 }
  0xb6   : > { %v582_v22 = vsub.f32 %v552_v18, %v580_v20  ;;  %v596_v23 = vsel %vm595_vm2, %v591_v21, inf }
  0xb7   : > { %597 = vmin.xlane.f32.xlu1 %v596_v23 }
  0xb8   : > { %v586_v24 = vmax.f32 %v582_v22, 1e-30 }
  0xba   : > { %v590_v25 = vand.u32 4294967280, %v586_v24 }
  0xbc   : > { %v592_v26 = vor.u32 %v590_v25, %v1381_v16 }
  0xbe   : > { %v599_v27 = vsel %vm595_vm2, %v592_v26, inf }
  0xbf   : > { %600 = vmin.xlane.f32.xlu1 %v599_v27 }
 0x12a   : > { %v598_v28 = vpop.xlane.xlu1 %597 }
 0x12b   : > { %v604_v29 = vand.u32 15, %v598_v28 }
 0x12d   : > { %vm1388_vm3 = vcmp.eq.s32.totalorder %v1381_v16, %v604_v29 }
 0x12e   : > { %v647_v31 = vsel %vm1388_vm3, 3e+38, %v591_v21  ;;  %v1020_v8 = vsel %vm1388_vm3, 1.0, %v1226_v54 }
 0x12f   : > { %v649_v32 = vsel %vm595_vm2, %v647_v31, inf }
 0x130   : > { %650 = vmin.xlane.f32.xlu2 %v649_v32 }
 0x132   : > { %v601_v33 = vpop.xlane.xlu1 %600 }
 0x133   : > { %v605_v34 = vand.u32 15, %v601_v33 }
 0x135   : > { %vm1396_vm4 = vcmp.eq.s32.totalorder %v1381_v16, %v605_v34 }
 0x136   : > { %v648_v36 = vsel %vm1396_vm4, 3e+38, %v592_v26  ;;  %v1021_v11 = vsel %vm1396_vm4, 1.0, %v1226_v54 }
 0x137   : > { %v652_v37 = vsel %vm595_vm2, %v648_v36, inf }
 0x138   : > { %653 = vmin.xlane.f32.xlu2 %v652_v37 }
 0x1a3   : > { %v651_v38 = vpop.xlane.xlu2 %650 }
 0x1a4   : > { %v657_v39 = vand.u32 15, %v651_v38 }
 0x1a6   : > { %vm1404_vm5 = vcmp.eq.s32.totalorder %v1381_v16, %v657_v39 }
 0x1a7   : > { %v702_v41 = vsel %vm1404_vm5, 3e+38, %v647_v31  ;;  %v1024_v4 = vsel %vm1404_vm5, 1.0, %v1226_v54 }
 0x1a8   : > { %v704_v42 = vsel %vm595_vm2, %v702_v41, inf }
 0x1a9   : > { %705 = vmin.xlane.f32.xlu0 %v704_v42 }
 0x1ab   : > { %v654_v43 = vpop.xlane.xlu2 %653 }
 0x1ac   : > { %v658_v44 = vand.u32 15, %v654_v43 }
 0x1ae   : > { %vm1412_vm6 = vcmp.eq.s32.totalorder %v1381_v16, %v658_v44 }
 0x1af   : > { %v703_v46 = vsel %vm1412_vm6, 3e+38, %v648_v36  ;;  %v1025_v9 = vsel %vm1412_vm6, 1.0, %v1226_v54 }
 0x1b0   : > { %v707_v47 = vsel %vm595_vm2, %v703_v46, inf }
 0x1b1   : > { %708 = vmin.xlane.f32.xlu1 %v707_v47 }
 0x1eb   : > { %431 = vxpose.xlu1.b32.start.end [1/1] (short) (narrow) %v430_v49, 16 }
 0x21c   : > { %v706_v52 = vpop.xlane.xlu0 %705 }
 0x21d   : > { %v712_v53 = vand.u32 15, %v706_v52 }
 0x21f   : > { %vm714_vm7 = vcmp.eq.s32.totalorder %v1381_v16, %v712_v53 }
 0x220   : > { %v1028_v55 = vsel %vm714_vm7, 1.0, %v1226_v54  ;;  %v757_v56 = vsel %vm714_vm7, 3e+38, %v702_v41 }
 0x221   : > { %1030 = vmatmul.msk.f32.vlgmr.msrb.gmra.mxu1 %vm595_vm2, %v1028_v55  ;;  %v759_v57 = vsel %vm595_vm2, %v757_v56, inf }
 0x222   : > { %760 = vmin.xlane.f32.xlu2 %v759_v57 }
 0x224   : > { %v709_v58 = vpop.xlane.xlu1 %708 }
 0x225   : > { %v713_v59 = vand.u32 15, %v709_v58 }
 0x227   : > { %vm715_vm8 = vcmp.eq.s32.totalorder %v1381_v16, %v713_v59 }
 0x228   : > { %v1029_v60 = vsel %vm715_vm8, 1.0, %v1226_v54  ;;  %v758_v61 = vsel %vm715_vm8, 3e+38, %v703_v46 }
 0x229   : > { %1031 = vmatmul.msk.f32.gmra.mxu1 %vm595_vm2, %v1029_v60  ;;  %v762_v62 = vsel %vm595_vm2, %v758_v61, inf }
 0x22a   : > { %763 = vmin.xlane.f32.xlu0 %v762_v62 }
 0x28f   : > { %v447_v0 = vpop.trf.xlu1 }
 0x290   : > { %1012 = vmatmul.msk.f32.vlgmr.msra.gmra.mxu0 %vm466_vm9, %v447_v0 }
 0x295   : > { %v761_v1 = vpop.xlane.xlu2 %760 }
 0x296   : > { %v767_v2 = vand.u32 15, %v761_v1 }
 0x297   : > { %v448_v3 = vpop.trf.xlu1 }
 0x298   : > { %vm769_vm10 = vcmp.eq.s32.totalorder %v1381_v16, %v767_v2  ;;  %1013 = vmatmul.msk.f32.vlgmr.msra.gmra.mxu3 %vm466_vm9, %v448_v3  ;;  %1026 = vmatmul.msk.f32.vlgmr.msrb.gmra.mxu0 %vm595_vm2, %v1024_v4 }
 0x299   : > { %v1032_v5 = vsel %vm769_vm10, 1.0, %v1226_v54 }
 0x29a   : > { %1034 = vmatmul.msk.f32.vlgmr.msrb.gmra.mxu2 %vm595_vm2, %v1032_v5 }
 0x29d   : > { %v764_v6 = vpop.xlane.xlu0 %763 }
 0x29e   : > { %v768_v7 = vand.u32 15, %v764_v6  ;;  %v743_v20 = vpop.f32.mrf.mxu1 }
 0x2a0   : > { %vm770_vm11 = vcmp.eq.s32.totalorder %v1381_v16, %v768_v7  ;;  %1022 = vmatmul.msk.f32.vlgmr.msrb.gmra.mxu3 %vm595_vm2, %v1020_v8  ;;  %1027 = vmatmul.msk.f32.gmra.mxu0 %vm595_vm2, %v1025_v9  ;;  %v1111_v16 = vld [vmem:[%s1507_s7] ss:$0 sm:$0xff] }
 0x2a1   : > { %v1033_v10 = vsel %vm770_vm11, 1.0, %v1226_v54 }
 0x2a2   : > { %1035 = vmatmul.msk.f32.gmra.mxu2 %vm595_vm2, %v1033_v10 }
 0x2a6   : > { %v746_v37 = vpop.f32.mrf.mxu1 }
 0x2a8   : > { %1023 = vmatmul.msk.f32.gmra.mxu3 %vm595_vm2, %v1021_v11 }
 0x30d   : > { %v490_v13 = vpop.f32.mrf.mxu0 }
 0x30e   : > { %v531_v15 = vsub.f32 %v490_v13, %v525_v12 }
 0x310   : > { %v537_v19 = vadd.f32 %v1111_v16, %v531_v15 }
 0x312   : > { %v744_v24 = vadd.f32 %v743_v20, %v537_v19 }
 0x314   : > { %v751_v31 = vmul.f32 0.1, %v744_v24  ;;  %vm749_vm14 = vcmp.gt.f32.partialorder %v744_v24, 0.0 }
 0x315   : > { %v688_v18 = vpop.f32.mrf.mxu0 }
 0x316   : > { %v689_v22 = vadd.f32 %v688_v18, %v537_v19  ;;  %v753_v41 = vsel %vm749_vm14, %v744_v24, %v751_v31 }
 0x318   : > { %v696_v26 = vmul.f32 0.1, %v689_v22  ;;  %vm694_vm12 = vcmp.gt.f32.partialorder %v689_v22, 0.0 }
 0x31a   : > { %v698_v33 = vsel %vm694_vm12, %v689_v22, %v696_v26 }
 0x31b   : > { %v493_v17 = vpop.f32.mrf.mxu3 }
 0x31c   : > { %v532_v23 = vsub.f32 %v493_v17, %v528_v14 }
 0x31d   : > { %v798_v21 = vpop.f32.mrf.mxu2  ;;  %v691_v32 = vpop.f32.mrf.mxu0 }
 0x31e   : > { %v538_v27 = vadd.f32 %v1111_v16, %v532_v23  ;;  %v799_v28 = vadd.f32 %v798_v21, %v537_v19 }
 0x320   : > { %v692_v34 = vadd.f32 %v691_v32, %v538_v27  ;;  %v806_v35 = vmul.f32 0.1, %v799_v28  ;;  %vm804_vm15 = vcmp.gt.f32.partialorder %v799_v28, 0.0  ;;  %v747_v40 = vadd.f32 %v746_v37, %v538_v27 }
 0x322   : > { %v697_v44 = vmul.f32 0.1, %v692_v34  ;;  %v808_v47 = vsel %vm804_vm15, %v799_v28, %v806_v35  ;;  %vm695_vm0 = vcmp.gt.f32.partialorder %v692_v34, 0.0  ;;  %v752_v50 = vmul.f32 0.1, %v747_v40 }
 0x323   : > { %v635_v25 = vpop.f32.mrf.mxu3  ;;  %vm750_vm3 = vcmp.gt.f32.partialorder %v747_v40, 0.0 }
 0x324   : > { %v636_v29 = vadd.f32 %v635_v25, %v537_v19  ;;  %v699_v51 = vsel %vm695_vm0, %v692_v34, %v697_v44  ;;  %v754_v55 = vsel %vm750_vm3, %v747_v40, %v752_v50 }
 0x325   : > { %v801_v38 = vpop.f32.mrf.mxu2 }
 0x326   : > { %vm641_vm13 = vcmp.gt.f32.partialorder %v636_v29, 0.0  ;;  %v643_v30 = vmul.f32 0.1, %v636_v29  ;;  %v802_v45 = vadd.f32 %v801_v38, %v538_v27 }
 0x328   : > { %v645_v36 = vsel %vm641_vm13, %v636_v29, %v643_v30  ;;  %v807_v52 = vmul.f32 0.1, %v802_v45  ;;  %vm805_vm4 = vcmp.gt.f32.partialorder %v802_v45, 0.0 }
 0x329   : > { %v700_v39 = vmax.f32 %v645_v36, %v698_v33 }
 0x32a   : > { %v809_v57 = vsel %vm805_vm4, %v802_v45, %v807_v52 }
 0x32b   : > { %v638_v42 = vpop.f32.mrf.mxu3  ;;  %v755_v43 = vmax.f32 %v700_v39, %v753_v41 }
 0x32c   : > { %v639_v46 = vadd.f32 %v638_v42, %v538_v27 }
 0x32d   : > { %v810_v48 = vmax.f32 %v755_v43, %v808_v47 }
 0x32e   : > { %vm642_vm1 = vcmp.gt.f32.partialorder %v639_v46, 0.0  ;;  %v644_v49 = vmul.f32 0.1, %v639_v46 }
 0x32f   : > { %812 = vxpose.xlu2.b32.start [1/2] (short) (narrow) %v810_v48, 16 }
 0x330   : > { %v646_v53 = vsel %vm642_vm1, %v639_v46, %v644_v49 }
 0x331   : > { %v701_v54 = vmax.f32 %v646_v53, %v699_v51 }
 0x333   : > { %v756_v56 = vmax.f32 %v701_v54, %v754_v55 }
 0x335   : > { %v811_v58 = vmax.f32 %v756_v56, %v809_v57 }
 0x337   : > { %813 = vxpose.xlu2.b32.end [2/2] (short) (narrow) %v811_v58, 16 }
 0x3c8   : > { %v828_v59 = vpop.trf.xlu2 }
 0x3c9   : > { %844 = vst.msk [vmem:[%s404_s11] sm:$0xff] %vm595_vm2, %v828_v59 }
 0x3d0   : > { %v829_v60 = vpop.trf.xlu2 }
 0x3d1   : > { %845 = vst.msk [vmem:[%s404_s11 + $0x8] sm:$0xff] %vm595_vm2, %v829_v60 }
 0x3d2   : > { %1169 = shalt.err (!%p1166_p0)
}
 0x3d3   : > { %s1227_s14 = smov 128   ;;  %s1228_s25 = smov 8  }
 0x3d4   : > { %1047 = dma.vmem_to_hbm [thread:$0]  (%p1325_p9), %s861_s16, 256, %s863_s17, %s847_s24, %s1227_s14, %s1227_s14, %s1228_s25  }
 0x3d5 PF: > { %s877_s26 = sand.u32 1, %s1204_s27   ;;  %p1054_p1 = pnand %p1001_p12, %p1332_p11 }
 0x3d6   : > { %s878_s11 = scalar_lea.sflag [#allocation4], %s877_s26 }
 0x3d7   : > { %p1055_p2 = pneg %p1054_p1 }
 0x3d9   : > { %1199 = dma.done.wait (%p1055_p2), %s878_s11, 256  }
 0x3da   : > { %1201 = vsyncadd (%p1055_p2), %s878_s11, 4294967040  ;;  %s24_s10 = sadd.s32 1, %s1224_s10   ;;  %s1523_s18 = sld [smem:[#allocation8_spill]] }
 0x3db   : > { %p21_p3 = scmp.ge.s32.totalorder %s24_s10, 4   ;;  %s1524_s27 = smov %s1208_s28 }
 0x3dc   : > { %s1525_s28 = smov %s1212_s29  ;;  %s1526_s29 = smov %s1330_s19 }
 0x3dd   : > { %s1527_s30 = smov %s1220_s9  ;;  %23 = sbr.rel (!%p21_p3) target bundleno = 6 (0x6), region = 109 }
 0x3e0   : > { %s1528_s9 = smov %s1523_s18 }
 0x3e2   :  { %884 = vsyncpa [#allocation3], 1 }
 0x3e3   :  { %886 = vsyncpa [#allocation3 + $0x1], 1 }
 0x3e4   :  { %887 = vsyncpa [#allocation4], 1 }
 0x3e5   :  { %889 = vsyncpa [#allocation4 + $0x1], 1 }

</bundles_post_ra>
